<compile_context>
chip_gen: v5e
topology: v5e:2x2
jax: 0.10.0
libtpu: 0.0.40
codegen_flags: <defaults>
</compile_context>

<pallas_src>
import functools

import jax
import jax.numpy as jnp
from jax.experimental import pallas as pl
from jax.experimental.pallas import tpu as pltpu

_LANE = 128                        # batch-tile granularity (sublane/MXU friendly)
_VMEM_BUDGET = 24 * 1024 * 1024    # stay comfortably under the 32 MiB scoped default


def _round_up(x, m):
    return ((x + m - 1) // m) * m


def _mlp_kernel(x_ref, w1_ref, b1_ref, w2_ref, b2_ref, w3_ref, b3_ref, o_ref):
    """One batch tile: three MXU matmuls (f32 accumulation) + f32 bias/ReLU."""
    cdt = w1_ref.dtype                      # compute dtype (bf16 by default)
    x = x_ref[...].astype(cdt)              # cast in-kernel; x ships over HBM once, unpadded

    h1 = jnp.dot(x, w1_ref[...], preferred_element_type=jnp.float32) + b1_ref[...]
    h1 = jnp.maximum(h1, 0.0)

    h2 = jnp.dot(h1.astype(cdt), w2_ref[...],
                 preferred_element_type=jnp.float32) + b2_ref[...]
    h2 = jnp.maximum(h2, 0.0)

    out = jnp.dot(h2.astype(cdt), w3_ref[...],
                  preferred_element_type=jnp.float32) + b3_ref[...]
    o_ref[...] = out.astype(o_ref.dtype)    # narrow (tile, output_dim) store


def prepare_params(w1, b1, w2, b2, w3, b3, compute_dtype=jnp.bfloat16):
    """One-time cast of weights to the MXU compute dtype; biases stay f32 (1, d)."""
    cast_w = lambda w: jnp.asarray(w, compute_dtype)
    cast_b = lambda b: jnp.asarray(b, jnp.float32).reshape(1, -1)
    return (cast_w(w1), cast_b(b1), cast_w(w2), cast_b(b2), cast_w(w3), cast_b(b3))


@functools.partial(jax.jit, static_argnames=("batch_tile",))
def discriminator_forward(x, w1, b1, w2, b2, w3, b3, *, batch_tile=1024):
    B, input_dim = x.shape
    hidden_dim = w1.shape[1]
    output_dim = w3.shape[1]
    out_dtype = x.dtype
    x_it = x.dtype.itemsize
    o_it = jnp.dtype(out_dtype).itemsize
    w_it = w1.dtype.itemsize

    # Biases as f32 row vectors (no-op if already prepared via prepare_params).
    b1 = b1.reshape(1, hidden_dim).astype(jnp.float32)
    b2 = b2.reshape(1, hidden_dim).astype(jnp.float32)
    b3 = b3.reshape(1, output_dim).astype(jnp.float32)

    # ---- batch-tile selection -------------------------------------------------
    # User tile rounded to a multiple of 128 (sublane/bf16-packing safe).
    tile = _round_up(max(int(batch_tile), 1), _LANE)
    # v7x: make sure the grid has >= 2 steps so ("parallel",) spans both TCs.
    tile = min(tile, _round_up(pl.cdiv(B, 2), _LANE))
    # VMEM budget: resident weights (double-buffered by default) + per-row cost of
    # x/out tiles (double-buffered) and the f32 + bf16 hidden intermediates.
    w_bytes = sum(int(a.size) * a.dtype.itemsize for a in (w1, w2, w3, b1, b2, b3))
    per_row_bytes = (2 * input_dim * x_it            # x tile, double-buffered
                     + 2 * output_dim * o_it         # out tile, double-buffered
                     + 2 * hidden_dim * 4            # h1, h2 in f32
                     + 2 * hidden_dim * w_it)        # bf16 copies fed to the MXU
    budget = max(_VMEM_BUDGET - 2 * w_bytes, 2 * 1024 * 1024)
    tile_cap = max((budget // max(per_row_bytes, 1)) // _LANE * _LANE, _LANE)
    tile = max(min(tile, tile_cap), _LANE)

    grid = (pl.cdiv(B, tile),)

    # Batch is tiled across the grid; weights/biases use constant index_maps so
    # they are DMA'd into VMEM once and stay resident for all grid steps.
    # Every non-batch BlockSpec dim equals the full array dim (legal regardless
    # of the (8,128) rule), so nothing is padded in the wrapper.
    in_specs = [
        pl.BlockSpec((tile, input_dim), lambda i: (i, 0)),        # x tile
        pl.BlockSpec((input_dim, hidden_dim), lambda i: (0, 0)),  # w1 (resident)
        pl.BlockSpec((1, hidden_dim), lambda i: (0, 0)),          # b1
        pl.BlockSpec((hidden_dim, hidden_dim), lambda i: (0, 0)), # w2 (resident)
        pl.BlockSpec((1, hidden_dim), lambda i: (0, 0)),          # b2
        pl.BlockSpec((hidden_dim, output_dim), lambda i: (0, 0)), # w3 (resident)
        pl.BlockSpec((1, output_dim), lambda i: (0, 0)),          # b3
    ]
    out_spec = pl.BlockSpec((tile, output_dim), lambda i: (i, 0))

    # Advisory cost estimate for the XLA scheduler.
    flops = 2 * B * (input_dim * hidden_dim + hidden_dim * hidden_dim
                     + hidden_dim * output_dim)
    bytes_accessed = (int(x.size) * x_it + w_bytes + B * output_dim * o_it)

    return pl.pallas_call(
        _mlp_kernel,
        out_shape=jax.ShapeDtypeStruct((B, output_dim), out_dtype),
        grid_spec=pltpu.PrefetchScalarGridSpec(
            num_scalar_prefetch=0,
            grid=grid,
            in_specs=in_specs,
            out_specs=out_spec,
        ),
        compiler_params=pltpu.CompilerParams(
            dimension_semantics=("parallel",),   # batch tiles shard across TCs
        ),
        cost_estimate=pl.CostEstimate(
            flops=flops, transcendentals=0, bytes_accessed=bytes_accessed),
    )(x, w1, b1, w2, b2, w3, b3)


def init_params(key, input_dim, hidden_dim, output_dim, dtype=jnp.float32):
    """Deterministic init mimicking nn.Linear's U(-1/sqrt(in), 1/sqrt(in))."""
    ks = jax.random.split(key, 6)

    def linear(kw, kb, fan_in, fan_out):
        bound = 1.0 / jnp.sqrt(jnp.float32(fan_in))
        w = jax.random.uniform(kw, (fan_in, fan_out), dtype, -bound, bound)
        b = jax.random.uniform(kb, (fan_out,), dtype, -bound, bound)
        return w, b

    w1, b1 = linear(ks[0], ks[1], input_dim, hidden_dim)
    w2, b2 = linear(ks[2], ks[3], hidden_dim, hidden_dim)
    w3, b3 = linear(ks[4], ks[5], hidden_dim, output_dim)
    return w1, b1, w2, b2, w3, b3


if __name__ == "__main__":
    # Small shapes consistent with the module's forward: x is (batch, input_dim).
    batch, input_dim, hidden_dim, output_dim = 8, 16, 32, 1

    key = jax.random.PRNGKey(0)
    k_x, k_p = jax.random.split(key)

    x = jax.random.normal(k_x, (batch, input_dim), dtype=jnp.float32)
    raw_params = init_params(k_p, input_dim, hidden_dim, output_dim)
    w1, b1, w2, b2, w3, b3 = raw_params

    # Reference in plain JAX (same math as the PyTorch forward).
    ref = jnp.maximum(x @ w1 + b1, 0.0)
    ref = jnp.maximum(ref @ w2 + b2, 0.0)
    ref = ref @ w3 + b3

    # f32-operand path: tight tolerance.
    params_f32 = prepare_params(*raw_params, compute_dtype=jnp.float32)
    out_f32 = jax.block_until_ready(discriminator_forward(x, *params_f32))
    assert out_f32.shape == (batch, output_dim)
    assert jnp.allclose(out_f32, ref, atol=1e-4, rtol=1e-4), \
        float(jnp.max(jnp.abs(out_f32 - ref)))

    # Default bf16-operand path (f32 accumulation): looser tolerance.
    params_bf16 = prepare_params(*raw_params)   # bf16 weights, prepared once
    out_bf16 = jax.block_until_ready(discriminator_forward(x, *params_bf16))
    assert out_bf16.shape == (batch, output_dim)
    assert jnp.allclose(out_bf16, ref, atol=5e-2, rtol=5e-2), \
        float(jnp.max(jnp.abs(out_bf16 - ref)))

    print("KERNEL_OK")
</pallas_src>

<mosaic_0001>
module attributes {stable_mosaic.version = 11 : i64} {
  func.func @_mlp_kernel(%arg0: i32, %arg1: memref<128x16xf32, #tpu.memory_space<vmem>>, %arg2: memref<16x32xf32, #tpu.memory_space<vmem>>, %arg3: memref<1x32xf32, #tpu.memory_space<vmem>>, %arg4: memref<32x32xf32, #tpu.memory_space<vmem>>, %arg5: memref<1x32xf32, #tpu.memory_space<vmem>>, %arg6: memref<32x1xf32, #tpu.memory_space<vmem>>, %arg7: memref<1x1xf32, #tpu.memory_space<vmem>>, %arg8: memref<128x1xf32, #tpu.memory_space<vmem>>) attributes {dimension_semantics = [#tpu.dimension_semantics<parallel>], iteration_bounds = array<i64: 1>, scalar_prefetch = 0 : i64, scratch_operands = 0 : i64, tpu.core_type = #tpu.core_type<tc>, window_params = [{transform_indices = @transform_0, window_bounds = array<i64: 128, 16>}, {pipeline_mode = #tpu.pipeline_mode<synchronous>, transform_indices = @transform_1, window_bounds = array<i64: 16, 32>}, {pipeline_mode = #tpu.pipeline_mode<synchronous>, transform_indices = @transform_2, window_bounds = array<i64: 1, 32>}, {pipeline_mode = #tpu.pipeline_mode<synchronous>, transform_indices = @transform_3, window_bounds = array<i64: 32, 32>}, {pipeline_mode = #tpu.pipeline_mode<synchronous>, transform_indices = @transform_4, window_bounds = array<i64: 1, 32>}, {pipeline_mode = #tpu.pipeline_mode<synchronous>, transform_indices = @transform_5, window_bounds = array<i64: 32, 1>}, {pipeline_mode = #tpu.pipeline_mode<synchronous>, transform_indices = @transform_6, window_bounds = array<i64: 1, 1>}, {transform_indices = @transform_7, window_bounds = array<i64: 128, 1>}]} {
    %c0 = arith.constant 0 : index
    %c0_0 = arith.constant 0 : index
    %0 = vector.load %arg1[%c0, %c0_0] : memref<128x16xf32, #tpu.memory_space<vmem>>, vector<128x16xf32>
    %c0_1 = arith.constant 0 : index
    %c0_2 = arith.constant 0 : index
    %1 = vector.load %arg2[%c0_1, %c0_2] : memref<16x32xf32, #tpu.memory_space<vmem>>, vector<16x32xf32>
    %cst = arith.constant dense<0.000000e+00> : vector<128x32xf32>
    %2 = tpu.matmul %0, %1, %cst {dimension_numbers = #tpu.dot_dimension_numbers<[1], [0], [0], [1], [0, 0, 1, 1], [], []>} : vector<128x16xf32>, vector<16x32xf32>, vector<128x32xf32> -> vector<128x32xf32>
    %c0_3 = arith.constant 0 : index
    %c0_4 = arith.constant 0 : index
    %3 = vector.load %arg3[%c0_3, %c0_4] : memref<1x32xf32, #tpu.memory_space<vmem>>, vector<1x32xf32>
    %4 = vector.broadcast %3 : vector<1x32xf32> to vector<128x32xf32>
    %5 = arith.addf %2, %4 : vector<128x32xf32>
    %cst_5 = arith.constant 0.000000e+00 : f32
    %6 = vector.broadcast %cst_5 : f32 to vector<128x32xf32>
    %7 = arith.maximumf %5, %6 : vector<128x32xf32>
    %c0_6 = arith.constant 0 : index
    %c0_7 = arith.constant 0 : index
    %8 = vector.load %arg4[%c0_6, %c0_7] : memref<32x32xf32, #tpu.memory_space<vmem>>, vector<32x32xf32>
    %cst_8 = arith.constant dense<0.000000e+00> : vector<128x32xf32>
    %9 = tpu.matmul %7, %8, %cst_8 {dimension_numbers = #tpu.dot_dimension_numbers<[1], [0], [0], [1], [0, 0, 1, 1], [], []>} : vector<128x32xf32>, vector<32x32xf32>, vector<128x32xf32> -> vector<128x32xf32>
    %c0_9 = arith.constant 0 : index
    %c0_10 = arith.constant 0 : index
    %10 = vector.load %arg5[%c0_9, %c0_10] : memref<1x32xf32, #tpu.memory_space<vmem>>, vector<1x32xf32>
    %11 = vector.broadcast %10 : vector<1x32xf32> to vector<128x32xf32>
    %12 = arith.addf %9, %11 : vector<128x32xf32>
    %cst_11 = arith.constant 0.000000e+00 : f32
    %13 = vector.broadcast %cst_11 : f32 to vector<128x32xf32>
    %14 = arith.maximumf %12, %13 : vector<128x32xf32>
    %c0_12 = arith.constant 0 : index
    %c0_13 = arith.constant 0 : index
    %15 = vector.load %arg6[%c0_12, %c0_13] : memref<32x1xf32, #tpu.memory_space<vmem>>, vector<32x1xf32>
    %cst_14 = arith.constant dense<0.000000e+00> : vector<128x1xf32>
    %16 = tpu.matmul %14, %15, %cst_14 {dimension_numbers = #tpu.dot_dimension_numbers<[1], [0], [0], [1], [0, 0, 1, 1], [], []>} : vector<128x32xf32>, vector<32x1xf32>, vector<128x1xf32> -> vector<128x1xf32>
    %c0_15 = arith.constant 0 : index
    %c0_16 = arith.constant 0 : index
    %17 = vector.load %arg7[%c0_15, %c0_16] : memref<1x1xf32, #tpu.memory_space<vmem>>, vector<1x1xf32>
    %18 = vector.broadcast %17 : vector<1x1xf32> to vector<128x1xf32>
    %19 = arith.addf %16, %18 : vector<128x1xf32>
    %c0_17 = arith.constant 0 : index
    %c0_18 = arith.constant 0 : index
    %20 = vector.load %arg8[%c0_17, %c0_18] : memref<128x1xf32, #tpu.memory_space<vmem>>, vector<128x1xf32>
    tpu.vector_store %arg8[%c0_17, %c0_18], %19 {strides = array<i32>} : memref<128x1xf32, #tpu.memory_space<vmem>>, vector<128x1xf32>,
    return
  }
  func.func @transform_0(%arg0: i32) -> (i32, i32) {
    %c0_i32 = arith.constant 0 : i32
    %c0_i32_0 = arith.constant 0 : i32
    return %arg0, %c0_i32 : i32, i32
  }
  func.func @transform_1(%arg0: i32) -> (i32, i32) {
    %c0_i32 = arith.constant 0 : i32
    %c0_i32_0 = arith.constant 0 : i32
    %c0_i32_1 = arith.constant 0 : i32
    return %c0_i32, %c0_i32_0 : i32, i32
  }
  func.func @transform_2(%arg0: i32) -> (i32, i32) {
    %c0_i32 = arith.constant 0 : i32
    %c0_i32_0 = arith.constant 0 : i32
    %c0_i32_1 = arith.constant 0 : i32
    return %c0_i32, %c0_i32_0 : i32, i32
  }
  func.func @transform_3(%arg0: i32) -> (i32, i32) {
    %c0_i32 = arith.constant 0 : i32
    %c0_i32_0 = arith.constant 0 : i32
    %c0_i32_1 = arith.constant 0 : i32
    return %c0_i32, %c0_i32_0 : i32, i32
  }
  func.func @transform_4(%arg0: i32) -> (i32, i32) {
    %c0_i32 = arith.constant 0 : i32
    %c0_i32_0 = arith.constant 0 : i32
    %c0_i32_1 = arith.constant 0 : i32
    return %c0_i32, %c0_i32_0 : i32, i32
  }
  func.func @transform_5(%arg0: i32) -> (i32, i32) {
    %c0_i32 = arith.constant 0 : i32
    %c0_i32_0 = arith.constant 0 : i32
    %c0_i32_1 = arith.constant 0 : i32
    return %c0_i32, %c0_i32_0 : i32, i32
  }
  func.func @transform_6(%arg0: i32) -> (i32, i32) {
    %c0_i32 = arith.constant 0 : i32
    %c0_i32_0 = arith.constant 0 : i32
    %c0_i32_1 = arith.constant 0 : i32
    return %c0_i32, %c0_i32_0 : i32, i32
  }
  func.func @transform_7(%arg0: i32) -> (i32, i32) {
    %c0_i32 = arith.constant 0 : i32
    %c0_i32_0 = arith.constant 0 : i32
    return %arg0, %c0_i32 : i32, i32
  }
}

</mosaic_0001>

<bundles_post_ra>
// kernel: discriminator_forward.1
= control target key start
LH: loop header
LB: loop body
LE: loop exit
PB: predicated region body
PF: predicated region fallthrough
CT: control target
= control target key end

     0   :  { %s800_s0 = inlined_call_operand.hbm [shape: f32[8,16], index: 0, kind: input, shape index: {}]   ;;  %s801_s1 = inlined_call_operand.hbm [shape: f32[16,32], index: 1, kind: input, shape index: {}]   ;;  %s802_s2 = inlined_call_operand.vmem [shape: f32[1,32], index: 2, kind: input, shape index: {}]   ;;  %s803_s3 = inlined_call_operand.vmem [shape: f32[32,32], index: 3, kind: input, shape index: {}]   ;;  %s804_s4 = inlined_call_operand.vmem [shape: f32[1,32], index: 4, kind: input, shape index: {}]   ;;  %s805_s5 = inlined_call_operand.vmem [shape: f32[32,1], index: 5, kind: input, shape index: {}]   ;;  %s806_s6 = inlined_call_operand.<no memory space> [shape: f32[1,1], index: 6, kind: input, shape index: {}]   ;;  %s807_s7 = inlined_call_operand.vmem [shape: f32[8,1], index: 7, kind: output, shape index: {}]  }
   0x1   :  { %v12_v0 = vstv %s806_s6 }
   0x2   :  { %13 = vst [vmem:[#allocation2] sm:$0x1] %v12_v0 }
   0x3   :  { %14 = vsyncpa [#allocation4], 0 }
   0x4   :  { %15 = vsyncpa [#allocation6], 0 }
   0x5   :  { %19 = vsyncadd [#allocation4], 1920  ;;  %s20_s28 = sshll.u32 %s800_s0, 4  ;;  %s648_s29 = smov [#allocation3]   ;;  %s21_s28 = int_to_ptr.hbm [resolvable:$true] %s20_s28 }
   0x6   :  { %s22_s30 = sshll.u32 %s648_s29, 4  ;;  %s33_s10 = sshll.u32 %s801_s1, 4  ;;  %s23_s30 = int_to_ptr.vmem [resolvable:$true] %s22_s30  ;;  %s34_s10 = int_to_ptr.hbm [resolvable:$true] %s33_s10 }
   0x7   :  { %s649_s11 = smov 128   ;;  %s650_s12 = smov 8  }
   0x8   :  { %28 = dma.hbm_to_vmem [thread:$0]  %s21_s28, 128, %s23_s30, [#allocation4], %s649_s11, %s649_s11, %s650_s12  }
   0x9   :  { %s651_s6 = smov [#allocation5]  }
   0xa   :  { %s35_s13 = sshll.u32 %s651_s6, 4  ;;  %s36_s13 = int_to_ptr.vmem [resolvable:$true] %s35_s13 }
   0xb   :  { %41 = dma.hbm_to_vmem [thread:$0]  %s34_s10, 256, %s36_s13, [#allocation6], %s649_s11, %s649_s11, %s650_s12  }
   0xc   :  { %644 = dma.done.wait [#allocation4], 2048  }
   0xd   :  { %645 = vsyncadd [#allocation4], 4294965248 }
   0xe   :  { %646 = dma.done.wait [#allocation6], 256  }
   0xf   :  { %647 = vsyncadd [#allocation6], 4294967040  ;;  %v77_v1 = vld [vmem:[#allocation5 + $0x8] sm:$0xff]  ;;  %v76_v2 = vld [vmem:[#allocation5] sm:$0xff]  ;;  %vm82_vm0 = vcmask 130048   ;;  %vm220_vm1 = vcmask 261120  }
  0x10   :  { %145 = vmatpush.msra.mxu0 %v77_v1  ;;  %v60_v3 = vld [vmem:[#allocation3] sm:$0xff]  ;;  %579 = vmatpush.msra.mxu3 %v77_v1  ;;  %v61_v4 = vld [vmem:[#allocation3 + $0x8] sm:$0xff]  ;;  %v62_v5 = vld [vmem:[#allocation3 + $0x10] sm:$0xff]  ;;  %vm471_vm2 = vcmask 7168  }
  0x11   :  { %v63_v6 = vld [vmem:[#allocation3 + $0x18] sm:$0xff]  ;;  %v64_v7 = vld [vmem:[#allocation3 + $0x20] sm:$0xff]  ;;  %v65_v8 = vld [vmem:[#allocation3 + $0x28] sm:$0xff] }
  0x12   :  { %146 = vmatpush.msra.mxu0 %v76_v2  ;;  %580 = vmatpush.msra.mxu3 %v76_v2  ;;  %v66_v9 = vld [vmem:[#allocation3 + $0x30] sm:$0xff]  ;;  %v67_v10 = vld [vmem:[#allocation3 + $0x38] sm:$0xff]  ;;  %v68_v11 = vld [vmem:[#allocation3 + $0x40] sm:$0xff] }
  0x13   :  { %531 = vmatmul.msk.f32.vlgmr.msra.gmra.mxu0 %vm82_vm0, %v60_v3  ;;  %v73_v12 = vld [vmem:[#allocation3 + $0x68] sm:$0xff]  ;;  %v215_v13 = vld [vmem:[%s803_s3 + $0x18] sm:$0xff]  ;;  %v72_v20 = vld [vmem:[#allocation3 + $0x60] sm:$0xff] }
  0x14   :  { %544 = vmatmul.msk.f32.vlgmr.msra.gmra.mxu3 %vm82_vm0, %v73_v12  ;;  %281 = vmatpush.msra.mxu1 %v215_v13  ;;  %v69_v14 = vld [vmem:[#allocation3 + $0x48] sm:$0xff]  ;;  %v74_v15 = vld [vmem:[#allocation3 + $0x70] sm:$0xff]  ;;  %v75_v17 = vld [vmem:[#allocation3 + $0x78] sm:$0xff] }
  0x15   :  { %581 = vmatpush.msrb.mxu3 %v215_v13  ;;  %v70_v16 = vld [vmem:[#allocation3 + $0x50] sm:$0xff]  ;;  %v71_v18 = vld [vmem:[#allocation3 + $0x58] sm:$0xff]  ;;  %v213_v21 = vld [vmem:[%s803_s3 + $0x8] sm:$0xff] }
  0x16   :  { %v214_v19 = vld [vmem:[%s803_s3 + $0x10] sm:$0xff]  ;;  %v212_v22 = vld [vmem:[%s803_s3] sm:$0xff]  ;;  %v353_v60 = vld [vmem:[%s805_s5 + $0x18] sm:$0xff] }
  0x17   :  { %282 = vmatpush.msra.mxu1 %v214_v19  ;;  %582 = vmatpush.msrb.mxu3 %v214_v19  ;;  %v732_v23 = vld [vmem:[%s802_s2] ss:$0 sm:$0xff]  ;;  %v352_v0 = vld [vmem:[%s805_s5 + $0x10] sm:$0xff]  ;;  %v351_v2 = vld [vmem:[%s805_s5 + $0x8] sm:$0xff] }
  0x18   :  { %418 = vmatpush.msra.mxu2 %v353_v60  ;;  %v594_v12 = vld [vmem:[%s804_s4] ss:$0 sm:$0xff] }
  0x19   :  { %283 = vmatpush.msra.mxu1 %v213_v21  ;;  %583 = vmatpush.msrb.mxu3 %v213_v21 }
  0x1a   :  { %419 = vmatpush.msra.mxu2 %v352_v0 }
  0x1b   :  { %532 = vmatmul.msk.f32.gmra.mxu0 %vm82_vm0, %v61_v4  ;;  %284 = vmatpush.msra.mxu1 %v212_v22  ;;  %v350_v4 = vld [vmem:[%s805_s5] sm:$0xff] }
  0x1c   :  { %545 = vmatmul.msk.f32.gmra.mxu3 %vm82_vm0, %v74_v15  ;;  %420 = vmatpush.msra.mxu2 %v351_v2 }
  0x1d   :  { %584 = vmatpush.msrb.mxu3 %v212_v22 }
  0x1e   :  { %421 = vmatpush.msra.mxu2 %v350_v4 }
  0x1f   :  { %585 = vmatpush.msra.mxu3 %v353_v60 }
  0x21   :  { %586 = vmatpush.msra.mxu3 %v352_v0 }
  0x23   :  { %533 = vmatmul.msk.f32.gmra.mxu0 %vm82_vm0, %v62_v5  ;;  %587 = vmatpush.msra.mxu3 %v351_v2 }
  0x24   :  { %546 = vmatmul.msk.f32.gmra.mxu3 %vm82_vm0, %v75_v17 }
  0x25   :  { %588 = vmatpush.msra.mxu3 %v350_v4 }
  0x2b   :  { %534 = vmatmul.msk.f32.gmra.mxu0 %vm82_vm0, %v63_v6 }
  0x33   :  { %535 = vmatmul.msk.f32.gmra.mxu0 %vm82_vm0, %v64_v7 }
  0x3b   :  { %536 = vmatmul.msk.f32.gmra.mxu0 %vm82_vm0, %v65_v8 }
  0x43   :  { %537 = vmatmul.msk.f32.gmra.mxu0 %vm82_vm0, %v66_v9 }
  0x4b   :  { %538 = vmatmul.msk.f32.gmra.mxu0 %vm82_vm0, %v67_v10 }
  0x53   :  { %539 = vmatmul.msk.f32.gmra.mxu0 %vm82_vm0, %v68_v11 }
  0x5b   :  { %540 = vmatmul.msk.f32.gmra.mxu0 %vm82_vm0, %v69_v14 }
  0x63   :  { %541 = vmatmul.msk.f32.gmra.mxu0 %vm82_vm0, %v70_v16 }
  0x6b   :  { %542 = vmatmul.msk.f32.gmra.mxu0 %vm82_vm0, %v71_v18 }
  0x73   :  { %543 = vmatmul.msk.f32.gmra.mxu0 %vm82_vm0, %v72_v20 }
  0x90   :  { %v148_v24 = vpop.f32.mrf.mxu0 }
  0x91   :  { %v149_v25 = vadd.f32 %v732_v23, %v148_v24 }
  0x93   :  { %v196_v26 = vmax.f32 %v149_v25, 0.0 }
  0x95   :  { %547 = vmatmul.msk.f32.vlgmr.msra.gmra.mxu1 %vm220_vm1, %v196_v26 }
  0x97   :  { %v187_v61 = vpop.f32.mrf.mxu3 }
  0x98   :  { %v151_v27 = vpop.f32.mrf.mxu0  ;;  %v188_v3 = vadd.f32 %v732_v23, %v187_v61  ;;  %v595_v61 = vld [vmem:[#allocation2] ss:$0 sm:$0xff] }
  0x99   :  { %v152_v28 = vadd.f32 %v732_v23, %v151_v27 }
  0x9a   :  { %v209_v6 = vmax.f32 %v188_v3, 0.0 }
  0x9b   :  { %v197_v29 = vmax.f32 %v152_v28, 0.0 }
  0x9d   :  { %548 = vmatmul.msk.f32.gmra.mxu1 %vm220_vm1, %v197_v29 }
  0x9f   :  { %v190_v5 = vpop.f32.mrf.mxu3 }
  0xa0   :  { %v154_v30 = vpop.f32.mrf.mxu0  ;;  %v191_v7 = vadd.f32 %v732_v23, %v190_v5 }
  0xa1   :  { %v155_v31 = vadd.f32 %v732_v23, %v154_v30 }
  0xa2   :  { %v210_v8 = vmax.f32 %v191_v7, 0.0 }
  0xa3   :  { %v198_v32 = vmax.f32 %v155_v31, 0.0 }
  0xa5   :  { %549 = vmatmul.msk.f32.gmra.mxu1 %vm220_vm1, %v198_v32 }
  0xa7   :  { %v193_v9 = vpop.f32.mrf.mxu3 }
  0xa8   :  { %v157_v33 = vpop.f32.mrf.mxu0  ;;  %v194_v10 = vadd.f32 %v732_v23, %v193_v9 }
  0xa9   :  { %v158_v34 = vadd.f32 %v732_v23, %v157_v33 }
  0xaa   :  { %v211_v11 = vmax.f32 %v194_v10, 0.0 }
  0xab   :  { %v199_v35 = vmax.f32 %v158_v34, 0.0 }
  0xad   :  { %550 = vmatmul.msk.f32.gmra.mxu1 %vm220_vm1, %v199_v35 }
  0xb0   :  { %v160_v36 = vpop.f32.mrf.mxu0 }
  0xb1   :  { %v161_v37 = vadd.f32 %v732_v23, %v160_v36 }
  0xb3   :  { %v200_v38 = vmax.f32 %v161_v37, 0.0 }
  0xb5   :  { %551 = vmatmul.msk.f32.gmra.mxu1 %vm220_vm1, %v200_v38 }
  0xb8   :  { %v163_v39 = vpop.f32.mrf.mxu0 }
  0xb9   :  { %v164_v40 = vadd.f32 %v732_v23, %v163_v39 }
  0xbb   :  { %v201_v41 = vmax.f32 %v164_v40, 0.0 }
  0xbd   :  { %552 = vmatmul.msk.f32.gmra.mxu1 %vm220_vm1, %v201_v41 }
  0xc0   :  { %v166_v42 = vpop.f32.mrf.mxu0 }
  0xc1   :  { %v167_v43 = vadd.f32 %v732_v23, %v166_v42 }
  0xc3   :  { %v202_v44 = vmax.f32 %v167_v43, 0.0 }
  0xc5   :  { %553 = vmatmul.msk.f32.gmra.mxu1 %vm220_vm1, %v202_v44 }
  0xc8   :  { %v169_v45 = vpop.f32.mrf.mxu0 }
  0xc9   :  { %v170_v46 = vadd.f32 %v732_v23, %v169_v45 }
  0xcb   :  { %v203_v47 = vmax.f32 %v170_v46, 0.0 }
  0xcd   :  { %554 = vmatmul.msk.f32.gmra.mxu1 %vm220_vm1, %v203_v47 }
  0xd0   :  { %v172_v48 = vpop.f32.mrf.mxu0 }
  0xd1   :  { %v173_v49 = vadd.f32 %v732_v23, %v172_v48 }
  0xd3   :  { %v204_v50 = vmax.f32 %v173_v49, 0.0 }
  0xd5   :  { %555 = vmatmul.msk.f32.gmra.mxu1 %vm220_vm1, %v204_v50 }
  0xd8   :  { %v175_v51 = vpop.f32.mrf.mxu0 }
  0xd9   :  { %v176_v52 = vadd.f32 %v732_v23, %v175_v51 }
  0xdb   :  { %v205_v53 = vmax.f32 %v176_v52, 0.0 }
  0xdd   :  { %556 = vmatmul.msk.f32.gmra.mxu1 %vm220_vm1, %v205_v53 }
  0xe0   :  { %v178_v54 = vpop.f32.mrf.mxu0 }
  0xe1   :  { %v179_v55 = vadd.f32 %v732_v23, %v178_v54 }
  0xe3   :  { %v206_v56 = vmax.f32 %v179_v55, 0.0 }
  0xe5   :  { %557 = vmatmul.msk.f32.gmra.mxu1 %vm220_vm1, %v206_v56 }
  0xe8   :  { %v181_v57 = vpop.f32.mrf.mxu0 }
  0xe9   :  { %v182_v58 = vadd.f32 %v732_v23, %v181_v57 }
  0xeb   :  { %v207_v59 = vmax.f32 %v182_v58, 0.0 }
  0xed   :  { %558 = vmatmul.msk.f32.gmra.mxu1 %vm220_vm1, %v207_v59 }
  0xf0   :  { %v184_v62 = vpop.f32.mrf.mxu0 }
  0xf1   :  { %v185_v63 = vadd.f32 %v732_v23, %v184_v62 }
  0xf3   :  { %v208_v1 = vmax.f32 %v185_v63, 0.0 }
  0xf5   :  { %559 = vmatmul.msk.f32.vlgmr.msrb.gmra.mxu3 %vm220_vm1, %v208_v1 }
  0xfd   :  { %560 = vmatmul.msk.f32.gmra.mxu3 %vm220_vm1, %v209_v6 }
 0x105   :  { %561 = vmatmul.msk.f32.gmra.mxu3 %vm220_vm1, %v210_v8 }
 0x10d   :  { %562 = vmatmul.msk.f32.gmra.mxu3 %vm220_vm1, %v211_v11 }
 0x112   :  { %v286_v13 = vpop.f32.mrf.mxu1 }
 0x113   :  { %v287_v14 = vadd.f32 %v594_v12, %v286_v13 }
 0x115   :  { %v334_v15 = vmax.f32 %v287_v14, 0.0 }
 0x117   :  { %563 = vmatmul.msk.f32.vlgmr.msra.gmra.mxu2 %vm220_vm1, %v334_v15 }
 0x11a   :  { %v289_v16 = vpop.f32.mrf.mxu1 }
 0x11b   :  { %v290_v17 = vadd.f32 %v594_v12, %v289_v16 }
 0x11d   :  { %v335_v18 = vmax.f32 %v290_v17, 0.0 }
 0x11f   :  { %564 = vmatmul.msk.f32.gmra.mxu2 %vm220_vm1, %v335_v18 }
 0x122   :  { %v292_v19 = vpop.f32.mrf.mxu1 }
 0x123   :  { %v293_v20 = vadd.f32 %v594_v12, %v292_v19 }
 0x125   :  { %v336_v21 = vmax.f32 %v293_v20, 0.0 }
 0x127   :  { %565 = vmatmul.msk.f32.gmra.mxu2 %vm220_vm1, %v336_v21 }
 0x12a   :  { %v295_v22 = vpop.f32.mrf.mxu1 }
 0x12b   :  { %v296_v23 = vadd.f32 %v594_v12, %v295_v22 }
 0x12d   :  { %v337_v24 = vmax.f32 %v296_v23, 0.0 }
 0x12f   :  { %566 = vmatmul.msk.f32.gmra.mxu2 %vm220_vm1, %v337_v24 }
 0x132   :  { %v298_v25 = vpop.f32.mrf.mxu1 }
 0x133   :  { %v299_v26 = vadd.f32 %v594_v12, %v298_v25 }
 0x135   :  { %v338_v27 = vmax.f32 %v299_v26, 0.0 }
 0x137   :  { %567 = vmatmul.msk.f32.gmra.mxu2 %vm220_vm1, %v338_v27 }
 0x13a   :  { %v301_v28 = vpop.f32.mrf.mxu1 }
 0x13b   :  { %v302_v29 = vadd.f32 %v594_v12, %v301_v28 }
 0x13d   :  { %v339_v30 = vmax.f32 %v302_v29, 0.0 }
 0x13f   :  { %568 = vmatmul.msk.f32.gmra.mxu2 %vm220_vm1, %v339_v30 }
 0x142   :  { %v304_v31 = vpop.f32.mrf.mxu1 }
 0x143   :  { %v305_v32 = vadd.f32 %v594_v12, %v304_v31 }
 0x145   :  { %v340_v33 = vmax.f32 %v305_v32, 0.0 }
 0x147   :  { %569 = vmatmul.msk.f32.gmra.mxu2 %vm220_vm1, %v340_v33 }
 0x14a   :  { %v307_v34 = vpop.f32.mrf.mxu1 }
 0x14b   :  { %v308_v35 = vadd.f32 %v594_v12, %v307_v34 }
 0x14d   :  { %v341_v36 = vmax.f32 %v308_v35, 0.0 }
 0x14f   :  { %570 = vmatmul.msk.f32.gmra.mxu2 %vm220_vm1, %v341_v36 }
 0x152   :  { %v310_v37 = vpop.f32.mrf.mxu1 }
 0x153   :  { %v311_v38 = vadd.f32 %v594_v12, %v310_v37 }
 0x155   :  { %v342_v39 = vmax.f32 %v311_v38, 0.0 }
 0x157   :  { %571 = vmatmul.msk.f32.gmra.mxu2 %vm220_vm1, %v342_v39 }
 0x15a   :  { %v313_v40 = vpop.f32.mrf.mxu1 }
 0x15b   :  { %v314_v41 = vadd.f32 %v594_v12, %v313_v40 }
 0x15d   :  { %v343_v42 = vmax.f32 %v314_v41, 0.0 }
 0x15f   :  { %572 = vmatmul.msk.f32.gmra.mxu2 %vm220_vm1, %v343_v42 }
 0x162   :  { %v316_v43 = vpop.f32.mrf.mxu1 }
 0x163   :  { %v317_v44 = vadd.f32 %v594_v12, %v316_v43 }
 0x165   :  { %v344_v45 = vmax.f32 %v317_v44, 0.0 }
 0x167   :  { %573 = vmatmul.msk.f32.gmra.mxu2 %vm220_vm1, %v344_v45 }
 0x16a   :  { %v319_v46 = vpop.f32.mrf.mxu1 }
 0x16b   :  { %v320_v47 = vadd.f32 %v594_v12, %v319_v46 }
 0x16d   :  { %v345_v48 = vmax.f32 %v320_v47, 0.0 }
 0x16f   :  { %574 = vmatmul.msk.f32.gmra.mxu2 %vm220_vm1, %v345_v48 }
 0x178   :  { %v322_v49 = vpop.f32.mrf.mxu3 }
 0x179   :  { %v323_v50 = vadd.f32 %v594_v12, %v322_v49 }
 0x17b   :  { %v346_v51 = vmax.f32 %v323_v50, 0.0 }
 0x17d   :  { %575 = vmatmul.msk.f32.vlgmr.msra.gmra.mxu3 %vm220_vm1, %v346_v51 }
 0x180   :  { %v325_v52 = vpop.f32.mrf.mxu3 }
 0x181   :  { %v326_v53 = vadd.f32 %v594_v12, %v325_v52 }
 0x183   :  { %v347_v54 = vmax.f32 %v326_v53, 0.0 }
 0x185   :  { %576 = vmatmul.msk.f32.gmra.mxu3 %vm220_vm1, %v347_v54 }
 0x188   :  { %v328_v55 = vpop.f32.mrf.mxu3 }
 0x189   :  { %v329_v56 = vadd.f32 %v594_v12, %v328_v55 }
 0x18b   :  { %v348_v57 = vmax.f32 %v329_v56, 0.0 }
 0x18d   :  { %577 = vmatmul.msk.f32.gmra.mxu3 %vm220_vm1, %v348_v57 }
 0x190   :  { %v331_v58 = vpop.f32.mrf.mxu3 }
 0x191   :  { %v332_v59 = vadd.f32 %v594_v12, %v331_v58 }
 0x193   :  { %v349_v60 = vmax.f32 %v332_v59, 0.0 }
 0x195   :  { %578 = vmatmul.msk.f32.gmra.mxu3 %vm220_vm1, %v349_v60 }
 0x19a   :  { %v423_v62 = vpop.f32.mrf.mxu2 }
 0x19b   :  { %v424_v63 = vadd.f32 %v595_v61, %v423_v62 }
 0x19d   :  { %472 = vst.msk [vmem:[#allocation7] sm:$0xff] %vm471_vm2, %v424_v63 }
 0x1a2   :  { %v426_v0 = vpop.f32.mrf.mxu2 }
 0x1a4   :  { %v518_v1 = vld [vmem:[#allocation7] sm:$0xff] }
 0x1a5   :  { %519 = vst [vmem:[%s807_s7] sm:$0xff] %v518_v1 }
 0x1aa   :  { %v429_v2 = vpop.f32.mrf.mxu2 }
 0x1b2   :  { %v432_v3 = vpop.f32.mrf.mxu2 }
 0x1ba   :  { %v435_v4 = vpop.f32.mrf.mxu2 }
 0x1c2   :  { %v438_v5 = vpop.f32.mrf.mxu2 }
 0x1ca   :  { %v441_v6 = vpop.f32.mrf.mxu2 }
 0x1d2   :  { %v444_v7 = vpop.f32.mrf.mxu2 }
 0x1da   :  { %v447_v8 = vpop.f32.mrf.mxu2 }
 0x1e2   :  { %v450_v9 = vpop.f32.mrf.mxu2 }
 0x1ea   :  { %v453_v10 = vpop.f32.mrf.mxu2 }
 0x1f2   :  { %v456_v11 = vpop.f32.mrf.mxu2 }
 0x200   :  { %v459_v12 = vpop.f32.mrf.mxu3 }
 0x208   :  { %v462_v13 = vpop.f32.mrf.mxu3 }
 0x210   :  { %v465_v14 = vpop.f32.mrf.mxu3 }
 0x218   :  { %v468_v15 = vpop.f32.mrf.mxu3 }
 0x219   :  { %525 = vsyncpa [#allocation4], 1 }
 0x21a   :  { %526 = vsyncpa [#allocation6], 1 }

</bundles_post_ra>
